<compile_context>
chip_gen: v7x
topology: tpu7x:2x2x1
jax: 0.10.0
libtpu: 0.0.40
codegen_flags: <defaults>
</compile_context>

<pallas_src>
import math
from functools import partial

import jax
import jax.numpy as jnp
from jax.experimental import pallas as pl
from jax.experimental.pallas import tpu as pltpu


# ----------------------------- fused forward kernel --------------------------
def _ar_forward_kernel(x_ref, w_ref, b_ref, o_ref):
    # x: (TB, T) ; w: (T, P) ; b: (1, P)  ->  o: (TB, S, P)
    preds = (
        jnp.dot(x_ref[...], w_ref[...], preferred_element_type=jnp.float32)
        + b_ref[...]
    )
    tb, s, p = o_ref.shape
    # Replicate the point forecast across the samples axis inside the kernel:
    # a cheap sublane broadcast in VMEM, written back by the pipeline DMA.
    o_ref[...] = jnp.broadcast_to(preds[:, None, :], (tb, s, p)).astype(o_ref.dtype)


def _choose_tb(B: int, T: int, S: int, P: int, itemsize: int,
               vmem_budget: int = 12 * 1024 * 1024) -> int:
    """Batch-tile rows so double-buffered (x + out) blocks fit a conservative
    VMEM budget (safe for v5e 16 MiB scoped default and v7x 64 MiB physical)."""
    per_row = 2 * (T + S * P) * max(itemsize, 4)   # x row + out row, double buffered
    tb = vmem_budget // max(per_row, 1)
    tb = min(tb, 512, B)
    if tb >= B:
        return B                    # single tile == full dim (always a legal block)
    return max(8, (tb // 8) * 8)    # keep sublane (8) alignment for interior tiles


def _ar_linear_replicated(past_target, w_t, b, num_parallel_samples: int):
    """past_target: (B, T); w_t: (T, P); b: (1, P) -> (B, S, P) in past_target dtype."""
    B, T = past_target.shape
    P = w_t.shape[1]
    S = num_parallel_samples
    itemsize = jnp.dtype(past_target.dtype).itemsize
    TB = _choose_tb(B, T, S, P, itemsize)
    grid = (pl.cdiv(B, TB),)

    cost = pl.CostEstimate(
        flops=2 * B * T * P,
        bytes_accessed=(B * T + T * P + P) * itemsize + B * S * P * itemsize,
        transcendentals=0,
    )

    return pl.pallas_call(
        _ar_forward_kernel,
        out_shape=jax.ShapeDtypeStruct((B, S, P), past_target.dtype),
        grid=grid,
        in_specs=[
            pl.BlockSpec((TB, T), lambda i: (i, 0)),   # batch-tiled activations
            pl.BlockSpec((T, P), lambda i: (0, 0)),    # weight resident across grid
            pl.BlockSpec((1, P), lambda i: (0, 0)),    # bias resident across grid
        ],
        out_specs=pl.BlockSpec((TB, S, P), lambda i: (i, 0, 0)),
        compiler_params=pltpu.CompilerParams(
            dimension_semantics=("parallel",),         # megacore-shard the batch grid
        ),
        cost_estimate=cost,
    )(past_target, w_t, b)


# ------------------------------ params / wrapper ------------------------------
def init_params(key, context_length: int, prediction_length: int):
    """PyTorch nn.Linear init: U(-1/sqrt(in_features), 1/sqrt(in_features)).
    Weight stored pre-transposed as (T, P) so the kernel is a plain row-major matmul."""
    bound = 1.0 / math.sqrt(context_length)
    k1, k2 = jax.random.split(key)
    w = jax.random.uniform(k1, (prediction_length, context_length), jnp.float32,
                           -bound, bound)
    b = jax.random.uniform(k2, (prediction_length,), jnp.float32, -bound, bound)
    return {"w_t": w.T, "b": b.reshape(1, prediction_length)}


@partial(jax.jit, static_argnames=("num_parallel_samples",))
def ar_prediction_forward(params, past_target, *, num_parallel_samples):
    """past_target: (batch, context_length)
    -> (batch, num_parallel_samples, prediction_length)."""
    # TODO(synk): upstream forward() is `pass`; deterministic point forecast
    # replicated across samples is assumed (no distribution-head sampling).
    return _ar_linear_replicated(past_target, params["w_t"], params["b"],
                                 num_parallel_samples)


if __name__ == "__main__":
    # Small shapes consistent with the module (defaults scaled down).
    batch = 2
    context_length = 8
    prediction_length = 4
    num_parallel_samples = 5

    key = jax.random.PRNGKey(0)
    pk, xk = jax.random.split(key)
    params = init_params(pk, context_length, prediction_length)
    past_target = jax.random.normal(xk, (batch, context_length), jnp.float32)

    out = ar_prediction_forward(params, past_target,
                                num_parallel_samples=num_parallel_samples)
    out = jax.block_until_ready(out)

    # Pure-JAX reference.
    ref2d = past_target @ params["w_t"] + params["b"]                  # (B, P)
    ref = jnp.broadcast_to(ref2d[:, None, :],
                           (batch, num_parallel_samples, prediction_length))

    assert out.shape == (batch, num_parallel_samples, prediction_length)
    assert bool(jnp.all(jnp.isfinite(out)))
    assert bool(jnp.allclose(out, ref, atol=1e-5, rtol=1e-5))
    print("KERNEL_OK")
</pallas_src>

<mosaic_0001>
module attributes {stable_mosaic.version = 11 : i64} {
  func.func @_ar_forward_kernel(%arg0: i32, %arg1: memref<2x8xf32, #tpu.memory_space<vmem>>, %arg2: memref<8x4xf32, #tpu.memory_space<vmem>>, %arg3: memref<1x4xf32, #tpu.memory_space<vmem>>, %arg4: memref<2x5x4xf32, #tpu.memory_space<vmem>>) attributes {dimension_semantics = [#tpu.dimension_semantics<parallel>], iteration_bounds = array<i64: 1>, scalar_prefetch = 0 : i64, scratch_operands = 0 : i64, tpu.core_type = #tpu.core_type<tc>, window_params = [{transform_indices = @transform_0, window_bounds = array<i64: 2, 8>}, {pipeline_mode = #tpu.pipeline_mode<synchronous>, transform_indices = @transform_1, window_bounds = array<i64: 8, 4>}, {pipeline_mode = #tpu.pipeline_mode<synchronous>, transform_indices = @transform_2, window_bounds = array<i64: 1, 4>}, {transform_indices = @transform_3, window_bounds = array<i64: 2, 5, 4>}]} {
    %c0 = arith.constant 0 : index
    %c0_0 = arith.constant 0 : index
    %0 = vector.load %arg1[%c0, %c0_0] : memref<2x8xf32, #tpu.memory_space<vmem>>, vector<2x8xf32>
    %c0_1 = arith.constant 0 : index
    %c0_2 = arith.constant 0 : index
    %1 = vector.load %arg2[%c0_1, %c0_2] : memref<8x4xf32, #tpu.memory_space<vmem>>, vector<8x4xf32>
    %cst = arith.constant dense<0.000000e+00> : vector<2x4xf32>
    %2 = tpu.matmul %0, %1, %cst {dimension_numbers = #tpu.dot_dimension_numbers<[1], [0], [0], [1], [0, 0, 1, 1], [], []>} : vector<2x8xf32>, vector<8x4xf32>, vector<2x4xf32> -> vector<2x4xf32>
    %c0_3 = arith.constant 0 : index
    %c0_4 = arith.constant 0 : index
    %3 = vector.load %arg3[%c0_3, %c0_4] : memref<1x4xf32, #tpu.memory_space<vmem>>, vector<1x4xf32>
    %4 = vector.broadcast %3 : vector<1x4xf32> to vector<2x4xf32>
    %5 = arith.addf %2, %4 : vector<2x4xf32>
    %6 = vector.shape_cast %5 : vector<2x4xf32> to vector<2x1x4xf32>
    %7 = vector.shape_cast %6 : vector<2x1x4xf32> to vector<2x1x4xf32>
    %8 = vector.broadcast %7 : vector<2x1x4xf32> to vector<2x5x4xf32>
    %c0_5 = arith.constant 0 : index
    %c0_6 = arith.constant 0 : index
    %c0_7 = arith.constant 0 : index
    %9 = vector.load %arg4[%c0_5, %c0_6, %c0_7] : memref<2x5x4xf32, #tpu.memory_space<vmem>>, vector<2x5x4xf32>
    tpu.vector_store %arg4[%c0_5, %c0_6, %c0_7], %8 {strides = array<i32>} : memref<2x5x4xf32, #tpu.memory_space<vmem>>, vector<2x5x4xf32>,
    return
  }
  func.func @transform_0(%arg0: i32) -> (i32, i32) {
    %c0_i32 = arith.constant 0 : i32
    %c0_i32_0 = arith.constant 0 : i32
    return %arg0, %c0_i32 : i32, i32
  }
  func.func @transform_1(%arg0: i32) -> (i32, i32) {
    %c0_i32 = arith.constant 0 : i32
    %c0_i32_0 = arith.constant 0 : i32
    %c0_i32_1 = arith.constant 0 : i32
    return %c0_i32, %c0_i32_0 : i32, i32
  }
  func.func @transform_2(%arg0: i32) -> (i32, i32) {
    %c0_i32 = arith.constant 0 : i32
    %c0_i32_0 = arith.constant 0 : i32
    %c0_i32_1 = arith.constant 0 : i32
    return %c0_i32, %c0_i32_0 : i32, i32
  }
  func.func @transform_3(%arg0: i32) -> (i32, i32, i32) {
    %c0_i32 = arith.constant 0 : i32
    %c0_i32_0 = arith.constant 0 : i32
    %c0_i32_1 = arith.constant 0 : i32
    return %arg0, %c0_i32, %c0_i32_0 : i32, i32, i32
  }
}

</mosaic_0001>

<bundles_post_ra>
// kernel: ar_prediction_forward.1
= control target key start
LH: loop header
LB: loop body
LE: loop exit
PB: predicated region body
PF: predicated region fallthrough
CT: control target
= control target key end

     0   :  { %vm23_vm0 = vcmask 64512   ;;  %v149_v0 = vmov 0.0   ;;  %vm150_vm1 = vmmov 0   ;;  %v151_v3 = vmov 1966171168   ;;  %s187_s1 = inlined_call_operand.vmem [shape: f32[8,4], index: 1, kind: input, shape index: {}]   ;;  %s188_s0 = inlined_call_operand.vmem [shape: f32[2,8], index: 0, kind: input, shape index: {}]   ;;  %s189_s2 = inlined_call_operand.vmem [shape: f32[1,4], index: 2, kind: input, shape index: {}]   ;;  %s190_s3 = inlined_call_operand.vmem [shape: f32[2,5,4], index: 3, kind: output, shape index: {}]  }
   0x1   :  { %141 = vmatprep.subr.mxu0 %v149_v0  ;;  %v15_v1 = vld [vmem:[%s187_s1] sm:$0xff]  ;;  %143 = vmatprep.mubr.msk.f32.mxu0 %vm150_vm1, %v149_v0  ;;  %v99_v4 = vunpack.c.l.s4 %v151_v3  ;;  %v101_v5 = vlaneseq  ;;  %vm130_vm2 = vcmask 28672  }
   0x2   :  { %v14_v2 = vld [vmem:[%s188_s0] sm:$0x3]  ;;  %142 = vmatpush3.msra.mxu0 %v15_v1 }
   0x3   :  { %144 = vmatmul.mubr.msk.f32.vlgmr.msra.gmra.mrb[0].mxu0 %vm23_vm0, %v14_v2  ;;  %v100_v6 = vunpack.c.0.s8 %v99_v4  ;;  %v102_v7 = vshrl.u32 %v101_v5, 7  ;;  %v137_v8 = vld [vmem:[%s189_s2] ss:$0 sm:$0xff] }
   0x5   :  { %v103_v9 = vsub.s32 %v100_v6, %v102_v7  ;;  %v122_v14 = vsub.s32 0, %v102_v7 }
  0xd6   :  { %v93_v10 = vpop.f32.mrb[0].mxu0 }
  0xd7   :  { %v94_v11 = vadd.f32 %v137_v8, %v93_v10  ;;  %v145_v12 = vpop.f32.mrb[1].mxu0 }
  0xd9   :  { %v104_v13 = vrot.slane %v94_v11, %v103_v9 }
  0xdb   :  { %v105_v15 = vcombine.high %v104_v13, %v104_v13  ;;  %v112_v16 = vrot.slane %v104_v13, %v103_v9 }
  0xdd   :  { %v119_v17 = vrot.slane %v105_v15, %v103_v9  ;;  %v123_v18 = vrot.slane %v112_v16, %v122_v14 }
  0xdf   :  { %v127_v19 = vrot.slane %v119_v17, %v122_v14  ;;  %131 = vst.msk [vmem:[%s190_s3] sm:$0x1f] %vm130_vm2, %v123_v18 }
  0xe1   :  { %132 = vst.msk [vmem:[%s190_s3 + $0x8] sm:$0x1f] %vm130_vm2, %v127_v19 }

</bundles_post_ra>
